<compile_context>
chip_gen: v7x
topology: tpu7x:2x2x1
jax: 0.10.0
libtpu: 0.0.40
codegen_flags: <defaults>
</compile_context>

<pallas_src>
import functools

import jax
import jax.numpy as jnp
from jax import lax
from jax.experimental import pallas as pl
from jax.experimental.pallas import tpu as pltpu


# -----------------------------------------------------------------------------
# Fused kernel: one grid step == one batch element; everything stays in VMEM/vregs.
# Activations are (channels, H*W): channels on sublanes, spatial on (dense) lanes.
# -----------------------------------------------------------------------------
def _bottleneck_kernel(x_ref, w1_ref, b1_ref, w2_ref, b2_ref, w3_ref, b3_ref,
                       xmask_ref, o_ref, *, H, W, lane_pad):
    C, P = x_ref.shape                       # (in_ch, H*W); batch dim squeezed
    half = w1_ref.shape[0]
    mm_dtype = w1_ref.dtype                  # bf16 (default) or f32

    x_t = x_ref[...]                         # (C, P) f32, lane-dense
    x_mm = x_t.astype(mm_dtype)

    # --- conv1x1 (C -> C/2) + ReLU: one MXU matmul, K = C (dense) -------------
    h1 = jnp.dot(w1_ref[...], x_mm, preferred_element_type=jnp.float32)
    h1 = jnp.maximum(h1 + b1_ref[...], 0.0)              # (half, P) f32
    h1m = h1.astype(mm_dtype)

    # --- conv3x3 SAME + ReLU: 9 tap-accumulating matmuls --------------------
    # Zero halo via an aligned lane-pad concat (no scratch, no border zeroing);
    # wrap-arounds across image rows are removed with the precomputed x-mask.
    zpad = jnp.zeros((half, lane_pad), mm_dtype)
    ext = jnp.concatenate([zpad, h1m, zpad], axis=1)     # (half, P + 2*lane_pad)

    acc = jnp.zeros((half, P), jnp.float32)
    for ky in range(3):
        for kx in range(3):
            a, b = ky - 1, kx - 1
            off = a * W + b                               # flattened spatial shift
            start = lane_pad + off
            s = ext[:, start:start + P]                   # (half, P) shifted copy
            if b != 0:                                    # kill row-boundary wraps
                s = s * xmask_ref[b + 1:b + 2, :]
            acc = acc + jnp.dot(w2_ref[ky * 3 + kx], s,
                                preferred_element_type=jnp.float32)
    h2 = jnp.maximum(acc + b2_ref[...], 0.0)              # (half, P) f32

    # --- conv1x1 (C/2 -> C) + bias + identity (NO final ReLU in this block) --
    out = jnp.dot(w3_ref[...], h2.astype(mm_dtype),
                  preferred_element_type=jnp.float32)
    o_ref[...] = (out + b3_ref[...] + x_t).astype(o_ref.dtype)


# -----------------------------------------------------------------------------
# Wrapper: free NCHW reshapes, weight/bias/mask packing, pallas_call plumbing.
# -----------------------------------------------------------------------------
def residual_bottleneck_block(x_nchw, params, *, matmul_dtype=jnp.bfloat16):
    """x_nchw: (B, C, H, W) float32 (PyTorch layout).  Returns (B, C, H, W) f32."""
    B, C, H, W = x_nchw.shape
    half = C // 2
    P = H * W
    lane_pad = max(128, ((W + 1 + 127) // 128) * 128)     # aligned zero halo width

    x2d = x_nchw.reshape(B, C, P)                          # free contiguous reshape

    # Weights: w1 (half, C), w2 OIHW (half, half, 3, 3) -> (9, half, half), w3 (C, half)
    w1k = params["w1"].astype(matmul_dtype)
    w2k = jnp.transpose(params["w2"], (2, 3, 0, 1)).reshape(9, half, half)
    w2k = w2k.astype(matmul_dtype)
    w3k = params["w3"].astype(matmul_dtype)
    b1k = params["b1"].reshape(half, 1).astype(jnp.float32)
    b2k = params["b2"].reshape(half, 1).astype(jnp.float32)
    b3k = params["b3"].reshape(C, 1).astype(jnp.float32)

    # x-boundary validity masks (one per horizontal tap offset b in {-1, 0, +1}).
    xs = jnp.arange(P, dtype=jnp.int32) % W
    xmask = jnp.stack([((xs + b) >= 0) & ((xs + b) < W) for b in (-1, 0, 1)], axis=0)
    xmask = xmask.astype(matmul_dtype)                     # (3, P) of {0, 1}

    kernel = functools.partial(_bottleneck_kernel, H=H, W=W, lane_pad=lane_pad)

    out2d = pl.pallas_call(
        kernel,
        out_shape=jax.ShapeDtypeStruct((B, C, P), jnp.float32),
        grid=(B,),
        in_specs=[
            pl.BlockSpec((None, C, P), lambda b: (b, 0, 0)),        # x (lane-dense)
            pl.BlockSpec((half, C), lambda b: (0, 0)),              # w1
            pl.BlockSpec((half, 1), lambda b: (0, 0)),              # b1
            pl.BlockSpec((9, half, half), lambda b: (0, 0, 0)),     # w2 taps
            pl.BlockSpec((half, 1), lambda b: (0, 0)),              # b2
            pl.BlockSpec((C, half), lambda b: (0, 0)),              # w3
            pl.BlockSpec((C, 1), lambda b: (0, 0)),                 # b3
            pl.BlockSpec((3, P), lambda b: (0, 0)),                 # x-boundary masks
        ],
        out_specs=pl.BlockSpec((None, C, P), lambda b: (b, 0, 0)),  # lane-dense stores
        compiler_params=pltpu.CompilerParams(
            dimension_semantics=("parallel",)),
    )(x2d, w1k, b1k, w2k, b2k, w3k, b3k, xmask)

    return out2d.reshape(B, C, H, W)


# -----------------------------------------------------------------------------
# Deterministic parameter init + pure-JAX reference (mirrors the PyTorch module).
# -----------------------------------------------------------------------------
def init_params(key, C):
    half = C // 2
    k1, k2, k3 = jax.random.split(key, 3)
    s = 0.1
    return dict(
        w1=s * jax.random.normal(k1, (half, C), jnp.float32),          # conv1 (O, I)
        b1=0.01 * jnp.ones((half,), jnp.float32),
        w2=s * jax.random.normal(k2, (half, half, 3, 3), jnp.float32), # conv2 OIHW
        b2=0.01 * jnp.ones((half,), jnp.float32),
        w3=s * jax.random.normal(k3, (C, half), jnp.float32),          # conv3 (O, I)
        b3=0.01 * jnp.ones((C,), jnp.float32),
    )


def _ref_forward(x, p):
    def conv1x1(h, w, b):
        return jnp.einsum("oi,bihw->bohw", w, h) + b[None, :, None, None]
    h = jax.nn.relu(conv1x1(x, p["w1"], p["b1"]))
    h = lax.conv_general_dilated(
        h, p["w2"], window_strides=(1, 1), padding=((1, 1), (1, 1)),
        dimension_numbers=("NCHW", "OIHW", "NCHW")) + p["b2"][None, :, None, None]
    h = jax.nn.relu(h)
    h = conv1x1(h, p["w3"], p["b3"])
    return h + x                       # no final ReLU in ResidualBottleneckBlock


# -----------------------------------------------------------------------------
if __name__ == "__main__":
    C, B, H, W = 32, 2, 16, 16         # in_ch=32 -> bottleneck 16; NCHW like PyTorch

    key = jax.random.PRNGKey(0)
    kx, kp = jax.random.split(key)
    x = jax.random.normal(kx, (B, C, H, W), jnp.float32)
    params = init_params(kp, C)

    ref = jax.block_until_ready(_ref_forward(x, params))

    # 1) Exact-math mode (f32 MXU operands): tight check against the XLA reference.
    fwd_f32 = jax.jit(functools.partial(residual_bottleneck_block,
                                        matmul_dtype=jnp.float32))
    out_f32 = jax.block_until_ready(fwd_f32(x, params))
    assert out_f32.shape == (B, C, H, W)
    err_f32 = float(jnp.max(jnp.abs(out_f32 - ref)))
    assert jnp.allclose(out_f32, ref, atol=1e-4, rtol=1e-4), err_f32

    # 2) Default perf mode (bf16 MXU operands, f32 accumulation): looser check.
    fwd_bf16 = jax.jit(functools.partial(residual_bottleneck_block,
                                         matmul_dtype=jnp.bfloat16))
    out_bf16 = jax.block_until_ready(fwd_bf16(x, params))
    err_bf16 = float(jnp.max(jnp.abs(out_bf16 - ref)))
    assert jnp.allclose(out_bf16, ref, atol=5e-2, rtol=5e-2), err_bf16

    print("KERNEL_OK")
</pallas_src>

<mosaic_0001>
module attributes {stable_mosaic.version = 11 : i64} {
  func.func @_bottleneck_kernel(%arg0: i32, %arg1: memref<1x32x256xf32, #tpu.memory_space<vmem>>, %arg2: memref<16x32xf32, #tpu.memory_space<vmem>>, %arg3: memref<16x1xf32, #tpu.memory_space<vmem>>, %arg4: memref<9x16x16xf32, #tpu.memory_space<vmem>>, %arg5: memref<16x1xf32, #tpu.memory_space<vmem>>, %arg6: memref<32x16xf32, #tpu.memory_space<vmem>>, %arg7: memref<32x1xf32, #tpu.memory_space<vmem>>, %arg8: memref<3x256xf32, #tpu.memory_space<vmem>>, %arg9: memref<1x32x256xf32, #tpu.memory_space<vmem>>) attributes {dimension_semantics = [#tpu.dimension_semantics<parallel>], iteration_bounds = array<i64: 2>, scalar_prefetch = 0 : i64, scratch_operands = 0 : i64, tpu.core_type = #tpu.core_type<tc>, window_params = [{transform_indices = @transform_0, window_bounds = array<i64: 1, 32, 256>}, {pipeline_mode = #tpu.pipeline_mode<synchronous>, transform_indices = @transform_1, window_bounds = array<i64: 16, 32>}, {pipeline_mode = #tpu.pipeline_mode<synchronous>, transform_indices = @transform_2, window_bounds = array<i64: 16, 1>}, {pipeline_mode = #tpu.pipeline_mode<synchronous>, transform_indices = @transform_3, window_bounds = array<i64: 9, 16, 16>}, {pipeline_mode = #tpu.pipeline_mode<synchronous>, transform_indices = @transform_4, window_bounds = array<i64: 16, 1>}, {pipeline_mode = #tpu.pipeline_mode<synchronous>, transform_indices = @transform_5, window_bounds = array<i64: 32, 16>}, {pipeline_mode = #tpu.pipeline_mode<synchronous>, transform_indices = @transform_6, window_bounds = array<i64: 32, 1>}, {pipeline_mode = #tpu.pipeline_mode<synchronous>, transform_indices = @transform_7, window_bounds = array<i64: 3, 256>}, {transform_indices = @transform_8, window_bounds = array<i64: 1, 32, 256>}]} {
    %c0 = arith.constant 0 : index
    %c0_0 = arith.constant 0 : index
    %c0_1 = arith.constant 0 : index
    %0 = vector.load %arg1[%c0, %c0_0, %c0_1] : memref<1x32x256xf32, #tpu.memory_space<vmem>>, vector<1x32x256xf32>
    %1 = vector.shape_cast %0 : vector<1x32x256xf32> to vector<32x256xf32>
    %c0_2 = arith.constant 0 : index
    %c0_3 = arith.constant 0 : index
    %2 = vector.load %arg2[%c0_2, %c0_3] : memref<16x32xf32, #tpu.memory_space<vmem>>, vector<16x32xf32>
    %cst = arith.constant dense<0.000000e+00> : vector<16x256xf32>
    %3 = tpu.matmul %2, %1, %cst {dimension_numbers = #tpu.dot_dimension_numbers<[1], [0], [0], [1], [0, 0, 1, 1], [], []>} : vector<16x32xf32>, vector<32x256xf32>, vector<16x256xf32> -> vector<16x256xf32>
    %c0_4 = arith.constant 0 : index
    %c0_5 = arith.constant 0 : index
    %4 = vector.load %arg3[%c0_4, %c0_5] : memref<16x1xf32, #tpu.memory_space<vmem>>, vector<16x1xf32>
    %5 = vector.broadcast %4 : vector<16x1xf32> to vector<16x256xf32>
    %6 = arith.addf %3, %5 : vector<16x256xf32>
    %cst_6 = arith.constant 0.000000e+00 : f32
    %7 = vector.broadcast %cst_6 : f32 to vector<16x256xf32>
    %8 = arith.maximumf %6, %7 : vector<16x256xf32>
    %cst_7 = arith.constant 0.000000e+00 : f32
    %9 = vector.broadcast %cst_7 : f32 to vector<16x128xf32>
    %10 = tpu.concatenate %9, %8, %9 in 1 : vector<16x128xf32>, vector<16x256xf32>, vector<16x128xf32> -> vector<16x512xf32>
    %cst_8 = arith.constant 0.000000e+00 : f32
    %11 = vector.broadcast %cst_8 : f32 to vector<16x256xf32>
    %12 = vector.extract_strided_slice %10 {offsets = [0, 111], sizes = [16, 256], strides = [1, 1]} : vector<16x512xf32> to vector<16x256xf32>
    %c0_9 = arith.constant 0 : index
    %c0_10 = arith.constant 0 : index
    %13 = vector.load %arg8[%c0_9, %c0_10] : memref<3x256xf32, #tpu.memory_space<vmem>>, vector<1x256xf32>
    %14 = vector.broadcast %13 : vector<1x256xf32> to vector<16x256xf32>
    %15 = arith.mulf %12, %14 : vector<16x256xf32>
    %c0_11 = arith.constant 0 : index
    %c0_12 = arith.constant 0 : index
    %c0_13 = arith.constant 0 : index
    %16 = vector.load %arg4[%c0_11, %c0_12, %c0_13] : memref<9x16x16xf32, #tpu.memory_space<vmem>>, vector<1x16x16xf32>
    %17 = vector.shape_cast %16 : vector<1x16x16xf32> to vector<16x16xf32>
    %cst_14 = arith.constant dense<0.000000e+00> : vector<16x256xf32>
    %18 = tpu.matmul %17, %15, %cst_14 {dimension_numbers = #tpu.dot_dimension_numbers<[1], [0], [0], [1], [0, 0, 1, 1], [], []>} : vector<16x16xf32>, vector<16x256xf32>, vector<16x256xf32> -> vector<16x256xf32>
    %19 = arith.addf %11, %18 : vector<16x256xf32>
    %20 = vector.extract_strided_slice %10 {offsets = [0, 112], sizes = [16, 256], strides = [1, 1]} : vector<16x512xf32> to vector<16x256xf32>
    %c1 = arith.constant 1 : index
    %c0_15 = arith.constant 0 : index
    %c0_16 = arith.constant 0 : index
    %21 = vector.load %arg4[%c1, %c0_15, %c0_16] : memref<9x16x16xf32, #tpu.memory_space<vmem>>, vector<1x16x16xf32>
    %22 = vector.shape_cast %21 : vector<1x16x16xf32> to vector<16x16xf32>
    %cst_17 = arith.constant dense<0.000000e+00> : vector<16x256xf32>
    %23 = tpu.matmul %22, %20, %cst_17 {dimension_numbers = #tpu.dot_dimension_numbers<[1], [0], [0], [1], [0, 0, 1, 1], [], []>} : vector<16x16xf32>, vector<16x256xf32>, vector<16x256xf32> -> vector<16x256xf32>
    %24 = arith.addf %19, %23 : vector<16x256xf32>
    %25 = vector.extract_strided_slice %10 {offsets = [0, 113], sizes = [16, 256], strides = [1, 1]} : vector<16x512xf32> to vector<16x256xf32>
    %c2 = arith.constant 2 : index
    %c0_18 = arith.constant 0 : index
    %26 = vector.load %arg8[%c2, %c0_18] : memref<3x256xf32, #tpu.memory_space<vmem>>, vector<1x256xf32>
    %27 = vector.broadcast %26 : vector<1x256xf32> to vector<16x256xf32>
    %28 = arith.mulf %25, %27 : vector<16x256xf32>
    %c2_19 = arith.constant 2 : index
    %c0_20 = arith.constant 0 : index
    %c0_21 = arith.constant 0 : index
    %29 = vector.load %arg4[%c2_19, %c0_20, %c0_21] : memref<9x16x16xf32, #tpu.memory_space<vmem>>, vector<1x16x16xf32>
    %30 = vector.shape_cast %29 : vector<1x16x16xf32> to vector<16x16xf32>
    %cst_22 = arith.constant dense<0.000000e+00> : vector<16x256xf32>
    %31 = tpu.matmul %30, %28, %cst_22 {dimension_numbers = #tpu.dot_dimension_numbers<[1], [0], [0], [1], [0, 0, 1, 1], [], []>} : vector<16x16xf32>, vector<16x256xf32>, vector<16x256xf32> -> vector<16x256xf32>
    %32 = arith.addf %24, %31 : vector<16x256xf32>
    %33 = vector.extract_strided_slice %10 {offsets = [0, 127], sizes = [16, 256], strides = [1, 1]} : vector<16x512xf32> to vector<16x256xf32>
    %c0_23 = arith.constant 0 : index
    %c0_24 = arith.constant 0 : index
    %34 = vector.load %arg8[%c0_23, %c0_24] : memref<3x256xf32, #tpu.memory_space<vmem>>, vector<1x256xf32>
    %35 = vector.broadcast %34 : vector<1x256xf32> to vector<16x256xf32>
    %36 = arith.mulf %33, %35 : vector<16x256xf32>
    %c3 = arith.constant 3 : index
    %c0_25 = arith.constant 0 : index
    %c0_26 = arith.constant 0 : index
    %37 = vector.load %arg4[%c3, %c0_25, %c0_26] : memref<9x16x16xf32, #tpu.memory_space<vmem>>, vector<1x16x16xf32>
    %38 = vector.shape_cast %37 : vector<1x16x16xf32> to vector<16x16xf32>
    %cst_27 = arith.constant dense<0.000000e+00> : vector<16x256xf32>
    %39 = tpu.matmul %38, %36, %cst_27 {dimension_numbers = #tpu.dot_dimension_numbers<[1], [0], [0], [1], [0, 0, 1, 1], [], []>} : vector<16x16xf32>, vector<16x256xf32>, vector<16x256xf32> -> vector<16x256xf32>
    %40 = arith.addf %32, %39 : vector<16x256xf32>
    %41 = vector.extract_strided_slice %10 {offsets = [0, 128], sizes = [16, 256], strides = [1, 1]} : vector<16x512xf32> to vector<16x256xf32>
    %c4 = arith.constant 4 : index
    %c0_28 = arith.constant 0 : index
    %c0_29 = arith.constant 0 : index
    %42 = vector.load %arg4[%c4, %c0_28, %c0_29] : memref<9x16x16xf32, #tpu.memory_space<vmem>>, vector<1x16x16xf32>
    %43 = vector.shape_cast %42 : vector<1x16x16xf32> to vector<16x16xf32>
    %cst_30 = arith.constant dense<0.000000e+00> : vector<16x256xf32>
    %44 = tpu.matmul %43, %41, %cst_30 {dimension_numbers = #tpu.dot_dimension_numbers<[1], [0], [0], [1], [0, 0, 1, 1], [], []>} : vector<16x16xf32>, vector<16x256xf32>, vector<16x256xf32> -> vector<16x256xf32>
    %45 = arith.addf %40, %44 : vector<16x256xf32>
    %46 = vector.extract_strided_slice %10 {offsets = [0, 129], sizes = [16, 256], strides = [1, 1]} : vector<16x512xf32> to vector<16x256xf32>
    %c2_31 = arith.constant 2 : index
    %c0_32 = arith.constant 0 : index
    %47 = vector.load %arg8[%c2_31, %c0_32] : memref<3x256xf32, #tpu.memory_space<vmem>>, vector<1x256xf32>
    %48 = vector.broadcast %47 : vector<1x256xf32> to vector<16x256xf32>
    %49 = arith.mulf %46, %48 : vector<16x256xf32>
    %c5 = arith.constant 5 : index
    %c0_33 = arith.constant 0 : index
    %c0_34 = arith.constant 0 : index
    %50 = vector.load %arg4[%c5, %c0_33, %c0_34] : memref<9x16x16xf32, #tpu.memory_space<vmem>>, vector<1x16x16xf32>
    %51 = vector.shape_cast %50 : vector<1x16x16xf32> to vector<16x16xf32>
    %cst_35 = arith.constant dense<0.000000e+00> : vector<16x256xf32>
    %52 = tpu.matmul %51, %49, %cst_35 {dimension_numbers = #tpu.dot_dimension_numbers<[1], [0], [0], [1], [0, 0, 1, 1], [], []>} : vector<16x16xf32>, vector<16x256xf32>, vector<16x256xf32> -> vector<16x256xf32>
    %53 = arith.addf %45, %52 : vector<16x256xf32>
    %54 = vector.extract_strided_slice %10 {offsets = [0, 143], sizes = [16, 256], strides = [1, 1]} : vector<16x512xf32> to vector<16x256xf32>
    %c0_36 = arith.constant 0 : index
    %c0_37 = arith.constant 0 : index
    %55 = vector.load %arg8[%c0_36, %c0_37] : memref<3x256xf32, #tpu.memory_space<vmem>>, vector<1x256xf32>
    %56 = vector.broadcast %55 : vector<1x256xf32> to vector<16x256xf32>
    %57 = arith.mulf %54, %56 : vector<16x256xf32>
    %c6 = arith.constant 6 : index
    %c0_38 = arith.constant 0 : index
    %c0_39 = arith.constant 0 : index
    %58 = vector.load %arg4[%c6, %c0_38, %c0_39] : memref<9x16x16xf32, #tpu.memory_space<vmem>>, vector<1x16x16xf32>
    %59 = vector.shape_cast %58 : vector<1x16x16xf32> to vector<16x16xf32>
    %cst_40 = arith.constant dense<0.000000e+00> : vector<16x256xf32>
    %60 = tpu.matmul %59, %57, %cst_40 {dimension_numbers = #tpu.dot_dimension_numbers<[1], [0], [0], [1], [0, 0, 1, 1], [], []>} : vector<16x16xf32>, vector<16x256xf32>, vector<16x256xf32> -> vector<16x256xf32>
    %61 = arith.addf %53, %60 : vector<16x256xf32>
    %62 = vector.extract_strided_slice %10 {offsets = [0, 144], sizes = [16, 256], strides = [1, 1]} : vector<16x512xf32> to vector<16x256xf32>
    %c7 = arith.constant 7 : index
    %c0_41 = arith.constant 0 : index
    %c0_42 = arith.constant 0 : index
    %63 = vector.load %arg4[%c7, %c0_41, %c0_42] : memref<9x16x16xf32, #tpu.memory_space<vmem>>, vector<1x16x16xf32>
    %64 = vector.shape_cast %63 : vector<1x16x16xf32> to vector<16x16xf32>
    %cst_43 = arith.constant dense<0.000000e+00> : vector<16x256xf32>
    %65 = tpu.matmul %64, %62, %cst_43 {dimension_numbers = #tpu.dot_dimension_numbers<[1], [0], [0], [1], [0, 0, 1, 1], [], []>} : vector<16x16xf32>, vector<16x256xf32>, vector<16x256xf32> -> vector<16x256xf32>
    %66 = arith.addf %61, %65 : vector<16x256xf32>
    %67 = vector.extract_strided_slice %10 {offsets = [0, 145], sizes = [16, 256], strides = [1, 1]} : vector<16x512xf32> to vector<16x256xf32>
    %c2_44 = arith.constant 2 : index
    %c0_45 = arith.constant 0 : index
    %68 = vector.load %arg8[%c2_44, %c0_45] : memref<3x256xf32, #tpu.memory_space<vmem>>, vector<1x256xf32>
    %69 = vector.broadcast %68 : vector<1x256xf32> to vector<16x256xf32>
    %70 = arith.mulf %67, %69 : vector<16x256xf32>
    %c8 = arith.constant 8 : index
    %c0_46 = arith.constant 0 : index
    %c0_47 = arith.constant 0 : index
    %71 = vector.load %arg4[%c8, %c0_46, %c0_47] : memref<9x16x16xf32, #tpu.memory_space<vmem>>, vector<1x16x16xf32>
    %72 = vector.shape_cast %71 : vector<1x16x16xf32> to vector<16x16xf32>
    %cst_48 = arith.constant dense<0.000000e+00> : vector<16x256xf32>
    %73 = tpu.matmul %72, %70, %cst_48 {dimension_numbers = #tpu.dot_dimension_numbers<[1], [0], [0], [1], [0, 0, 1, 1], [], []>} : vector<16x16xf32>, vector<16x256xf32>, vector<16x256xf32> -> vector<16x256xf32>
    %74 = arith.addf %66, %73 : vector<16x256xf32>
    %c0_49 = arith.constant 0 : index
    %c0_50 = arith.constant 0 : index
    %75 = vector.load %arg5[%c0_49, %c0_50] : memref<16x1xf32, #tpu.memory_space<vmem>>, vector<16x1xf32>
    %76 = vector.broadcast %75 : vector<16x1xf32> to vector<16x256xf32>
    %77 = arith.addf %74, %76 : vector<16x256xf32>
    %cst_51 = arith.constant 0.000000e+00 : f32
    %78 = vector.broadcast %cst_51 : f32 to vector<16x256xf32>
    %79 = arith.maximumf %77, %78 : vector<16x256xf32>
    %c0_52 = arith.constant 0 : index
    %c0_53 = arith.constant 0 : index
    %80 = vector.load %arg6[%c0_52, %c0_53] : memref<32x16xf32, #tpu.memory_space<vmem>>, vector<32x16xf32>
    %cst_54 = arith.constant dense<0.000000e+00> : vector<32x256xf32>
    %81 = tpu.matmul %80, %79, %cst_54 {dimension_numbers = #tpu.dot_dimension_numbers<[1], [0], [0], [1], [0, 0, 1, 1], [], []>} : vector<32x16xf32>, vector<16x256xf32>, vector<32x256xf32> -> vector<32x256xf32>
    %c0_55 = arith.constant 0 : index
    %c0_56 = arith.constant 0 : index
    %82 = vector.load %arg7[%c0_55, %c0_56] : memref<32x1xf32, #tpu.memory_space<vmem>>, vector<32x1xf32>
    %83 = vector.broadcast %82 : vector<32x1xf32> to vector<32x256xf32>
    %84 = arith.addf %81, %83 : vector<32x256xf32>
    %85 = arith.addf %84, %1 : vector<32x256xf32>
    %c0_57 = arith.constant 0 : index
    %c0_58 = arith.constant 0 : index
    %c0_59 = arith.constant 0 : index
    %86 = vector.load %arg9[%c0_57, %c0_58, %c0_59] : memref<1x32x256xf32, #tpu.memory_space<vmem>>, vector<1x32x256xf32>
    %87 = vector.shape_cast %86 : vector<1x32x256xf32> to vector<32x256xf32>
    %88 = vector.shape_cast %85 : vector<32x256xf32> to vector<1x32x256xf32>
    tpu.vector_store %arg9[%c0_57, %c0_58, %c0_59], %88 {strides = array<i32>} : memref<1x32x256xf32, #tpu.memory_space<vmem>>, vector<1x32x256xf32>,
    return
  }
  func.func @transform_0(%arg0: i32) -> (i32, i32, i32) {
    %c0_i32 = arith.constant 0 : i32
    %c0_i32_0 = arith.constant 0 : i32
    %c0_i32_1 = arith.constant 0 : i32
    return %arg0, %c0_i32, %c0_i32_0 : i32, i32, i32
  }
  func.func @transform_1(%arg0: i32) -> (i32, i32) {
    %c0_i32 = arith.constant 0 : i32
    %c0_i32_0 = arith.constant 0 : i32
    %c0_i32_1 = arith.constant 0 : i32
    return %c0_i32, %c0_i32_0 : i32, i32
  }
  func.func @transform_2(%arg0: i32) -> (i32, i32) {
    %c0_i32 = arith.constant 0 : i32
    %c0_i32_0 = arith.constant 0 : i32
    %c0_i32_1 = arith.constant 0 : i32
    return %c0_i32, %c0_i32_0 : i32, i32
  }
  func.func @transform_3(%arg0: i32) -> (i32, i32, i32) {
    %c0_i32 = arith.constant 0 : i32
    %c0_i32_0 = arith.constant 0 : i32
    %c0_i32_1 = arith.constant 0 : i32
    %c0_i32_2 = arith.constant 0 : i32
    return %c0_i32, %c0_i32_0, %c0_i32_1 : i32, i32, i32
  }
  func.func @transform_4(%arg0: i32) -> (i32, i32) {
    %c0_i32 = arith.constant 0 : i32
    %c0_i32_0 = arith.constant 0 : i32
    %c0_i32_1 = arith.constant 0 : i32
    return %c0_i32, %c0_i32_0 : i32, i32
  }
  func.func @transform_5(%arg0: i32) -> (i32, i32) {
    %c0_i32 = arith.constant 0 : i32
    %c0_i32_0 = arith.constant 0 : i32
    %c0_i32_1 = arith.constant 0 : i32
    return %c0_i32, %c0_i32_0 : i32, i32
  }
  func.func @transform_6(%arg0: i32) -> (i32, i32) {
    %c0_i32 = arith.constant 0 : i32
    %c0_i32_0 = arith.constant 0 : i32
    %c0_i32_1 = arith.constant 0 : i32
    return %c0_i32, %c0_i32_0 : i32, i32
  }
  func.func @transform_7(%arg0: i32) -> (i32, i32) {
    %c0_i32 = arith.constant 0 : i32
    %c0_i32_0 = arith.constant 0 : i32
    %c0_i32_1 = arith.constant 0 : i32
    return %c0_i32, %c0_i32_0 : i32, i32
  }
  func.func @transform_8(%arg0: i32) -> (i32, i32, i32) {
    %c0_i32 = arith.constant 0 : i32
    %c0_i32_0 = arith.constant 0 : i32
    %c0_i32_1 = arith.constant 0 : i32
    return %arg0, %c0_i32, %c0_i32_0 : i32, i32, i32
  }
}

</mosaic_0001>

<bundles_post_ra>
// kernel: residual_bottleneck_block.1
= control target key start
LH: loop header
LB: loop body
LE: loop exit
PB: predicated region body
PF: predicated region fallthrough
CT: control target
= control target key end

     0   :  { %s2020_s27 = smov 0   ;;  %s2376_s0 = inlined_call_operand.vmem [shape: f32[2,32,256], index: 0, kind: input, shape index: {}]   ;;  %s2377_s1 = inlined_call_operand.vmem [shape: f32[16,32], index: 1, kind: input, shape index: {}]   ;;  %s2378_s2 = inlined_call_operand.vmem [shape: f32[16,1], index: 2, kind: input, shape index: {}]   ;;  %s2379_s3 = inlined_call_operand.vmem [shape: f32[9,16,16], index: 3, kind: input, shape index: {}]   ;;  %s2380_s4 = inlined_call_operand.vmem [shape: f32[16,1], index: 4, kind: input, shape index: {}]   ;;  %s2381_s5 = inlined_call_operand.vmem [shape: f32[32,16], index: 5, kind: input, shape index: {}]   ;;  %s2382_s6 = inlined_call_operand.vmem [shape: f32[32,1], index: 6, kind: input, shape index: {}]   ;;  %s2383_s7 = inlined_call_operand.vmem [shape: f32[3,256], index: 7, kind: input, shape index: {}]   ;;  %s2384_s8 = inlined_call_operand.vmem [shape: f32[2,32,256], index: 8, kind: output, shape index: {}]  }
   0x1 LB: > { %s1723_s28 = sadd.s32 4294967295, %s1963_s27   ;;  %p1727_p0 = scmp.ge.s32.totalorder %s1963_s27, 1  ;;  %s1963_s27 = sphi %s2020_s27, %s18_s27  }
   0x2   : > { %p262_p1 = scmp.lt.s32.totalorder %s1963_s27, 3 }
   0x4   : > { %p263_p2 = pnand %p1727_p0, %p262_p1 }
   0x5   : > { %p296_p3 = scmp.lt.s32.totalorder (!%p263_p2), %s1723_s28, 1  ;;  %v418_v0 = vlaneseq (!%p263_p2)  ;;  %v1965_v1 = vmov (!%p263_p2), 0.0   ;;  %v1966_v2 = vmov (!%p263_p2), 0   ;;  %v316_v3 = vld [vmem:[%s2378_s2] sm:$0xff] (!%p263_p2)  ;;  %v317_v4 = vld [vmem:[%s2378_s2 + $0x8] sm:$0xff] (!%p263_p2)  ;;  %s1967_s19 = smov (!%p263_p2), 127  }
   0x6   : > { %266 = sbr.rel (%p263_p2) target bundleno = 876 (0x36c), region = 52  ;;  %399 = vmatprep.mubr.f32.mxu0 (!%p263_p2), %v1965_v1  ;;  %1875 = vset.pattern.permute.xlu0 (!%p263_p2), %v1966_v2  ;;  %v416_v6 = vld [vmem:[%s2383_s7] ss:$4 sm:$0x3] (!%p263_p2)  ;;  %s1968_s20 = smov (!%p263_p2), 1   ;;  %vm328_vm0 = vcmask (!%p263_p2), 261120  }
   0x7   : > { %320 = vperm.xlu0 (!%p263_p2), %1875, %v316_v3   ;;  %v419_v5 = vshrl.u32 (!%p263_p2), %v418_v0, 7  ;;  %909 = vmatprep.mubr.f32.mxu1 (!%p263_p2), %v1965_v1  ;;  %v1740_v7 = vld [vmem:[%s2383_s7 + $0x2] ss:$4 sm:$0x3] (!%p263_p2)  ;;  %s1969_s23 = smov (!%p263_p2), 15   ;;  %v315_v27 = vld [vmem:[%s2377_s1 + $0x8] sm:$0xff] (!%p263_p2) }
   0x8   : > { %1956 = vset.pattern.permute.xlu1 (!%p263_p2), %v1966_v2  ;;  %v314_v26 = vld [vmem:[%s2377_s1] sm:$0xff] (!%p263_p2)  ;;  %s1970_s26 = smov (!%p263_p2), 111   ;;  %s1971_s29 = smov (!%p263_p2), 113   ;;  %vm802_vm1 = vcmask (!%p263_p2), 1039360   ;;  %vm430_vm2 = vcmask (!%p263_p2), 908288   ;;  %vm830_vm3 = vcmask (!%p263_p2), 7168  }
   0x9   : > { %v420_v8 = vsub.s32 (!%p263_p2), 0, %v419_v5  ;;  %v424_v9 = vsub.s32 (!%p263_p2), 1, %v419_v5  ;;  %s1972_s30 = smov (!%p263_p2), 17   ;;  %vm702_vm4 = vcmask (!%p263_p2), 121856   ;;  %vm674_vm5 = vcmask (!%p263_p2), 924672   ;;  %s1973_s9 = smov (!%p263_p2), 16  }
   0xa   : > { %vm567_vm6 = vcmask (!%p263_p2), 138240   ;;  %s1974_s10 = smov (!%p263_p2), 112   ;;  %vm460_vm7 = vcmask (!%p263_p2), 130048   ;;  %vm1281_vm8 = vcmask (!%p263_p2), 916480  }
   0xb   : > { %325 = vperm.xlu0 (!%p263_p2), %1875, %v317_v4   ;;  %v421_v13 = vrot.slane (!%p263_p2), %v416_v6, %v420_v8  ;;  %v665_v14 = vrot.slane (!%p263_p2), %v1740_v7, %v420_v8  ;;  %v425_v23 = vrot.slane (!%p263_p2), %v416_v6, %v424_v9  ;;  %v669_v25 = vrot.slane (!%p263_p2), %v1740_v7, %v424_v9 }
   0xd   : > { %s2386_s28 = smov (!%p296_p3, %s1723_s28), 1  ;;  %798 = vrot.lane.b32.xlu1 %v421_v13, %s1967_s19 }
   0xe   : > { %s1775_s15 = sshll.u32 %s2386_s28, 6 }
   0xf   : > { %s300_s18 = scalar_lea.vmem %s2376_s0, %s1775_s15  ;;  %1016 = vrot.lane.b32.xlu0 %v665_v14, %s1968_s20  ;;  %s2355_s12 = scalar_lea.vmem %s2384_s8, %s1775_s15 }
  0x10   : > { %v2050_v10 = vld [vmem:[%s300_s18 + $0x8] sm:$0xff]  ;;  %v2052_v11 = vld [vmem:[%s300_s18 + $0x18] sm:$0xff]  ;;  %v2054_v12 = vld [vmem:[%s300_s18] sm:$0xff] }
  0x11   : > { %v1777_v15 = vpack.c.bf16 %v2052_v11, %v2050_v10  ;;  %v2058_v16 = vld [vmem:[%s300_s18 + $0x10] sm:$0xff]  ;;  %v2060_v17 = vld [vmem:[%s300_s18 + $0x28] sm:$0xff]  ;;  %v2062_v18 = vld [vmem:[%s300_s18 + $0x38] sm:$0xff]  ;;  %800 = vrot.lane.b32.xlu1 %v425_v23, %s1967_s19 }
  0x12   : > { %v1779_v19 = vpack.c.bf16 %v2058_v16, %v2054_v12  ;;  %v1781_v20 = vpack.c.bf16 %v2062_v18, %v2060_v17  ;;  %v2068_v21 = vld [vmem:[%s300_s18 + $0x20] sm:$0xff]  ;;  %v2070_v22 = vld [vmem:[%s300_s18 + $0x30] sm:$0xff] }
  0x13   : > { %1778 = vmatprep.subr.bf16.mxu0 %v1777_v15  ;;  %v1783_v24 = vpack.c.bf16 %v2070_v22, %v2068_v21  ;;  %1142 = vrot.lane.b32.xlu0 %v421_v13, %s1969_s23 }
  0x14   : > { %1780 = vmatpush1.bf16.msra.mxu0 %v1779_v19 }
  0x15   : > { %1782 = vmatprep.subr.bf16.mxu0 %v1781_v20  ;;  %1018 = vrot.lane.b32.xlu1 %v669_v25, %s1968_s20 }
  0x17   : > { %426 = vrot.lane.b32.xlu0 %v421_v13, %s1970_s26 }
  0x18   : > { %1784 = vmatpush1.bf16.msra.mxu0 %v1783_v24 }
  0x19   : > { %1144 = vrot.lane.b32.xlu1 %v425_v23, %s1969_s23 }
  0x1b   : > { %1732 = vmatmul.mubr.msk.f32.vlgmr.msra.gmra.mrb[0].mxu0 %vm328_vm0, %v314_v26  ;;  %670 = vrot.lane.b32.xlu0 %v665_v14, %s1971_s29 }
  0x1c   : > { %405 = vmatprep.mubr.f32.mxu0 %v1965_v1 }
  0x1d   : > { %428 = vrot.lane.b32.xlu1 %v425_v23, %s1970_s26 }
  0x1f   : > { %1733 = vmatmul.mubr.msk.f32.gmra.mrb[2].mxu0 %vm328_vm0, %v315_v27  ;;  %1377 = vrot.lane.b32.xlu0 %v665_v14, %s1972_s30 }
  0x20   : > { %539 = vmatprep.mubr.f32.mxu0 %v1965_v1 }
  0x21   : > { %672 = vrot.lane.b32.xlu1 %v669_v25, %s1971_s29 }
  0x25   : > { %1379 = vrot.lane.b32.xlu1 %v669_v25, %s1972_s30 }
  0x7f   : > { %v799_v28 = vpop.permute.xlu1 %798 }
  0x80   : > { %v807_v52 = vmul.f32 0.0, %v799_v28 }
  0x83   : > { %v801_v30 = vpop.permute.xlu1 %800 }
  0x84   : > { %v803_v41 = vsel %vm802_vm1, %v799_v28, %v801_v30 }
  0x86   : > { %v321_v29 = vpop.permute.xlu0 %320 }
  0x87   : > { %v1019_v32 = vpop.permute.xlu1 %1018 }
  0x88   : > { %v1026_v55 = vmul.f32 0.0, %v1019_v32 }
  0x8a   : > { %v326_v31 = vpop.permute.xlu0 %325 }
  0x8b   : > { %v1145_v34 = vpop.permute.xlu1 %1144 }
  0x8e   : > { %v2094_v33 = vpop.permute.xlu0 %1016 }
  0x8f   : > { %v429_v36 = vpop.permute.xlu1 %428  ;;  %v1020_v59 = vsel %vm830_vm3, %v2094_v33, %v1019_v32 }
  0x92   : > { %v2096_v35 = vpop.permute.xlu0 %1142 }
  0x93   : > { %v673_v45 = vpop.permute.xlu1 %672  ;;  %v1146_v63 = vsel %vm702_vm4, %v2096_v35, %v1145_v34 }
  0x96   : > { %v2098_v37 = vpop.permute.xlu0 %426 }
  0x97   : > { %v431_v44 = vsel %vm430_vm2, %v2098_v37, %v429_v36  ;;  %v1380_v8 = vpop.permute.xlu1 %1379 }
  0x9a   : > { %v2107_v48 = vpop.permute.xlu0 %670 }
  0x9b   : > { %v675_v0 = vsel %vm674_vm5, %v2107_v48, %v673_v45 }
  0x9e   : > { %v1378_v9 = vpop.permute.xlu0 %1377 }
  0xee   : > { %v401_v38 = vpop.f32.mrb[0].mxu0 }
  0xef   : > { %v402_v39 = vadd.f32 %v401_v38, %v321_v29  ;;  %v403_v40 = vpop.f32.mrb[1].mxu0 }
  0xf0   : > { %v404_v42 = vadd.f32 %v403_v40, %v321_v29 }
  0xf1   : > { %v2101_v43 = vmax.f32 %v402_v39, 0.0 }
  0xf2   : > { %v2105_v46 = vmax.f32 %v404_v42, 0.0  ;;  %v407_v47 = vpop.f32.mrb[2].mxu0 }
  0xf3   : > { %v408_v49 = vadd.f32 %v407_v47, %v326_v31  ;;  %v409_v50 = vpop.f32.mrb[3].mxu0  ;;  %v808_v51 = vmul.f32 %v803_v41, %v2101_v43  ;;  %v436_v58 = vmul.f32 %v431_v44, %v2101_v43  ;;  %v1024_v3 = vmul.f32 %v2094_v33, %v2101_v43 }
  0xf4   : > { %v410_v53 = vadd.f32 %v409_v50, %v326_v31  ;;  %v809_v54 = vmul.f32 %v801_v30, %v2105_v46  ;;  %v1891_v57 = vpack.i.bf16 %v2105_v46, %v2101_v43  ;;  %v437_v62 = vmul.f32 %v429_v36, %v2105_v46 }
  0xf5   : > { %v2111_v56 = vmax.f32 %v408_v49, 0.0  ;;  %v1025_v13 = vmul.f32 %v1020_v59, %v2105_v46  ;;  %v1150_v15 = vmul.f32 %v2096_v35, %v2101_v43  ;;  %v680_v27 = vmul.f32 %v675_v0, %v2101_v43 }
  0xf6   : > { %v2118_v60 = vmax.f32 %v410_v53, 0.0  ;;  %v1876_v61 = vpack.i.bf16 %v809_v54, %v808_v51  ;;  %v1911_v14 = vpack.i.bf16 %v437_v62, %v436_v58  ;;  %v681_v28 = vmul.f32 %v673_v45, %v2105_v46  ;;  %v1527_v58 = vld [vmem:[%s2382_s6] sm:$0xff]  ;;  %v1530_v62 = vld [vmem:[%s2382_s6 + $0x18] sm:$0xff] }
  0xf7   : > { %v810_v2 = vmul.f32 %v803_v41, %v2111_v56  ;;  %v438_v24 = vmul.f32 %v431_v44, %v2111_v56  ;;  %v682_v29 = vmul.f32 %v675_v0, %v2111_v56  ;;  %v1381_v31 = vsel %vm567_vm6, %v1378_v9, %v1380_v8 }
  0xf8   : > { %1877 = vrot.lane.b32.xlu0 %v1876_v61, %s1968_s20  ;;  %v811_v4 = vmul.f32 %v801_v30, %v2118_v60  ;;  %v1896_v5 = vpack.i.bf16 %v2118_v60, %v2111_v56  ;;  %v1028_v6 = vmul.f32 %v1020_v59, %v2118_v60  ;;  %v1921_v7 = vpack.i.bf16 %v2101_v43, %v2118_v60  ;;  %v1504_v59 = vld [vmem:[%s2380_s4 + $0x8] sm:$0xff] }
  0xf9   : > { %v1154_v19 = vmul.f32 %v1146_v63, %v2118_v60  ;;  %v439_v25 = vmul.f32 %v429_v36, %v2118_v60  ;;  %v1152_v30 = vmul.f32 0.0, %v1145_v34  ;;  %v683_v38 = vmul.f32 %v673_v45, %v2118_v60  ;;  %v1528_v61 = vld [vmem:[%s2382_s6 + $0x8] sm:$0xff] }
  0xfa   : > { %v1881_v20 = vpack.i.bf16 %v811_v4, %v810_v2  ;;  %v1906_v23 = vpack.i.bf16 %v1024_v3, %v1028_v6  ;;  %v1385_v39 = vmul.f32 %v1378_v9, %v2101_v43  ;;  %v1931_v36 = vpack.i.bf16 %v681_v28, %v680_v27 }
  0xfb   : > { %v1926_v26 = vpack.i.bf16 %v1150_v15, %v1154_v19  ;;  %v1941_v32 = vpack.i.bf16 %v439_v25, %v438_v24  ;;  %v1389_v40 = vmul.f32 %v1381_v31, %v2118_v60  ;;  %v1801_v41 = vpack.c.bf16 %v2118_v60, %v2105_v46 }
  0xfc   : > { %1882 = vrot.lane.b32.xlu1 %v1881_v20, %s1968_s20  ;;  %820 = vrot.lane.b32.xlu0 %v807_v52, %s1968_s20  ;;  %v1886_v42 = vpack.i.bf16 %v1026_v55, %v1025_v13  ;;  %v1151_v34 = vmul.f32 %v1146_v63, %v2105_v46  ;;  %v1946_v44 = vpack.i.bf16 %v683_v38, %v682_v29  ;;  %v435_v52 = vmul.f32 0.0, %v2098_v37  ;;  %v1503_v37 = vld [vmem:[%s2380_s4] sm:$0xff] }
  0xfd   : > { %v1803_v47 = vpack.c.bf16 %v2111_v56, %v2101_v43  ;;  %v1951_v49 = vpack.i.bf16 %v1385_v39, %v1389_v40  ;;  %v1027_v45 = vmul.f32 %v2094_v33, %v2111_v56  ;;  %v1153_v51 = vmul.f32 %v2096_v35, %v2111_v56 }
  0xfe   : > { %v1901_v50 = vpack.i.bf16 %v1152_v30, %v1151_v34  ;;  %v1916_v33 = vpack.i.bf16 %v1965_v1, %v2105_v46  ;;  %v1387_v35 = vmul.f32 0.0, %v1380_v8  ;;  %v1386_v53 = vmul.f32 %v1381_v31, %v2105_v46  ;;  %v1746_v30 = vld [vmem:[%s2379_s3 + $0x38] sm:$0xff] }
  0xff   : > { %v679_v55 = vmul.f32 0.0, %v2107_v48  ;;  %v1529_v48 = vld [vmem:[%s2382_s6 + $0x10] sm:$0xff] }
 0x100   : > { %1887 = vrot.lane.b32.xlu1 %v1886_v42, %s1967_s19  ;;  %1892 = vrot.lane.b32.xlu0 %v1891_v57, %s1973_s9  ;;  %v1936_v54 = vpack.i.bf16 %v1387_v35, %v1386_v53  ;;  %v1388_v57 = vmul.f32 %v1378_v9, %v2111_v56 }
 0x104   : > { %1043 = vrot.lane.b32.xlu1 %v1027_v45, %s1967_s19  ;;  %1902 = vrot.lane.b32.xlu0 %v1901_v50, %s1971_s29  ;;  %v1749_v50 = vld [vmem:[%s2379_s3 + $0x40] sm:$0xff] }
 0x108   : > { %1897 = vrot.lane.b32.xlu1 %v1896_v5, %s1973_s9  ;;  %1907 = vrot.lane.b32.xlu0 %v1906_v23, %s1967_s19  ;;  %v1745_v23 = vld [vmem:[%s2379_s3 + $0x30] sm:$0xff] }
 0x10c   : > { %1169 = vrot.lane.b32.xlu1 %v1153_v51, %s1971_s29  ;;  %450 = vrot.lane.b32.xlu0 %v1965_v1, %s1973_s9 }
 0x110   : > { %1922 = vrot.lane.b32.xlu1 %v1921_v7, %s1974_s10  ;;  %1912 = vrot.lane.b32.xlu0 %v1911_v14, %s1972_s30 }
 0x114   : > { %1927 = vrot.lane.b32.xlu1 %v1926_v26, %s1971_s29  ;;  %1917 = vrot.lane.b32.xlu0 %v1916_v33, %s1974_s10 }
 0x118   : > { %1277 = vrot.lane.b32.xlu1 %v2111_v56, %s1974_s10  ;;  %557 = vrot.lane.b32.xlu0 %v435_v52, %s1972_s30 }
 0x11c   : > { %1942 = vrot.lane.b32.xlu1 %v1941_v32, %s1972_s30  ;;  %1932 = vrot.lane.b32.xlu0 %v1931_v36, %s1969_s23 }
 0x120   : > { %1947 = vrot.lane.b32.xlu1 %v1946_v44, %s1969_s23  ;;  %1937 = vrot.lane.b32.xlu0 %v1936_v54, %s1970_s26  ;;  %v1750_v54 = vld [vmem:[%s2379_s3 + $0x48] sm:$0xff] }
 0x124   : > { %1952 = vrot.lane.b32.xlu1 %v1951_v49, %s1970_s26  ;;  %692 = vrot.lane.b32.xlu0 %v679_v55, %s1969_s23  ;;  %v1734_v55 = vld [vmem:[%s2379_s3 + $0x10] sm:$0xff] }
 0x128   : > { %1404 = vrot.lane.b32.xlu1 %v1388_v57, %s1970_s26  ;;  %1507 = vperm.xlu0 %1875, %v1503_v37  }
 0x12c   : > { %1533 = vperm.xlu0 %1875, %v1527_v58   ;;  %1512 = vperm.xlu1 %1956, %v1504_v59   ;;  %v1753_v59 = vld [vmem:[%s2379_s3 + $0x50] sm:$0xff] }
 0x130   : > { %1543 = vperm.xlu0 %1875, %v1529_v48   ;;  %1538 = vperm.xlu1 %1956, %v1528_v61  }
 0x134   : > { %1548 = vperm.xlu1 %1956, %v1530_v62  }
 0x16a   : > { %v1878_v63 = vpop.permute.xlu0 %1877 }
 0x16b   : > { %v1880_v0 = vunpack.i.h.bf16 %v1878_v63  ;;  %v1879_v2 = vunpack.i.l.bf16 %v1878_v63 }
 0x16d   : > { %v832_v9 = vsel %vm830_vm3, %v1879_v2, %v1880_v0 }
 0x16e   : > { %v1883_v3 = vpop.permute.xlu1 %1882  ;;  %v821_v4 = vpop.permute.xlu0 %820 }
 0x16f   : > { %v1885_v5 = vunpack.i.h.bf16 %v1883_v3  ;;  %v1884_v6 = vunpack.i.l.bf16 %v1883_v3  ;;  %v831_v7 = vsel %vm830_vm3, %v821_v4, %v1879_v2  ;;  %v1735_v3 = vld [vmem:[%s2379_s3 + $0x18] sm:$0xff] }
 0x171   : > { %v833_v8 = vsel %vm830_vm3, %v821_v4, %v1884_v6  ;;  %v834_v13 = vsel %vm830_vm3, %v1884_v6, %v1885_v5 }
 0x172   : > { %v1888_v14 = vpop.permute.xlu1 %1887  ;;  %v1893_v15 = vpop.permute.xlu0 %1892  ;;  %v1797_v19 = vpack.c.bf16 %v834_v13, %v832_v9  ;;  %v1799_v20 = vpack.c.bf16 %v833_v8, %v831_v7 }
 0x173   : > { %v1890_v26 = vunpack.i.h.bf16 %v1888_v14  ;;  %v1889_v27 = vunpack.i.l.bf16 %v1888_v14  ;;  %v1895_v28 = vunpack.i.h.bf16 %v1893_v15  ;;  %v1894_v29 = vunpack.i.l.bf16 %v1893_v15  ;;  %v1754_v15 = vld [vmem:[%s2379_s3 + $0x58] sm:$0xff] }
 0x174   : > { %1798 = vmatprep.subr.bf16.mxu1 %v1797_v19 }
 0x175   : > { %1800 = vmatpush1.bf16.msra.mxu1 %v1799_v20  ;;  %v462_v36 = vsel %vm460_vm7, %v1894_v29, %v1895_v28  ;;  %v1048_v40 = vsel %vm802_vm1, %v1889_v27, %v1890_v26 }
 0x176   : > { %v1044_v24 = vpop.permute.xlu1 %1043  ;;  %v2207_v25 = vpop.permute.xlu0 %1902  ;;  %1802 = vmatprep.subr.bf16.mxu1 %v1801_v41 }
 0x177   : > { %v1905_v37 = vunpack.i.h.bf16 %v2207_v25  ;;  %v1904_v57 = vunpack.i.l.bf16 %v2207_v25 }
 0x178   : > { %1747 = vmatmul.mubr.msk.f32.vlgmr.msra.gmra.mrb[0].mxu1 %vm460_vm7, %v1745_v23 }
 0x179   : > { %1804 = vmatpush1.bf16.msra.mxu1 %v1803_v47  ;;  %915 = vmatprep.mubr.f32.mxu1 %v1965_v1  ;;  %v1174_v6 = vsel %vm674_vm5, %v1904_v57, %v1905_v37 }
 0x17a   : > { %v1898_v31 = vpop.permute.xlu1 %1897  ;;  %v1908_v46 = vpop.permute.xlu0 %1907 }
 0x17b   : > { %v1900_v60 = vunpack.i.h.bf16 %v1898_v31  ;;  %v1899_v32 = vunpack.i.l.bf16 %v1898_v31  ;;  %v1910_v38 = vunpack.i.h.bf16 %v1908_v46  ;;  %v1909_v39 = vunpack.i.l.bf16 %v1908_v46 }
 0x17c   : > { %1748 = vmatmul.mubr.msk.f32.gmra.mrb[2].mxu1 %vm460_vm7, %v1746_v30  ;;  %v1757_v30 = vld [vmem:[%s2379_s3 + $0x60] sm:$0xff] }
 0x17d   : > { %v1047_v43 = vsel %vm802_vm1, %v1910_v38, %v1889_v27  ;;  %v1049_v56 = vsel %vm802_vm1, %v1044_v24, %v1909_v39  ;;  %v464_v41 = vsel %vm460_vm7, %v1899_v32, %v1900_v60  ;;  %999 = vmatprep.mubr.f32.mxu1 %v1965_v1  ;;  %v1050_v42 = vsel %vm802_vm1, %v1909_v39, %v1890_v26 }
 0x17e   : > { %v1807_v34 = vpack.c.bf16 %v1049_v56, %v1047_v43  ;;  %v1170_v44 = vpop.permute.xlu1 %1169  ;;  %v451_v47 = vpop.permute.xlu0 %450  ;;  %v1785_v49 = vpack.c.bf16 %v464_v41, %v462_v36  ;;  %v1805_v45 = vpack.c.bf16 %v1050_v42, %v1048_v40 }
 0x17f   : > { %v461_v51 = vsel %vm460_vm7, %v451_v47, %v1894_v29  ;;  %v463_v33 = vsel %vm460_vm7, %v451_v47, %v1899_v32  ;;  %v1758_v47 = vld [vmem:[%s2379_s3 + $0x68] sm:$0xff] }
 0x180   : > { %v1787_v52 = vpack.c.bf16 %v463_v33, %v461_v51  ;;  %1786 = vmatprep.subr.bf16.mxu0 %v1785_v49  ;;  %1806 = vmatprep.subr.bf16.mxu1 %v1805_v45  ;;  %v440_v33 = vld [vmem:[%s2379_s3] sm:$0xff] }
 0x181   : > { %1751 = vmatmul.mubr.msk.f32.vlgmr.msra.gmra.mrb[0].mxu1 %vm460_vm7, %v1749_v50 }
 0x182   : > { %1808 = vmatpush1.bf16.msra.mxu1 %v1807_v34  ;;  %v1923_v35 = vpop.permute.xlu1 %1922  ;;  %1788 = vmatpush1.bf16.msra.mxu0 %v1787_v52  ;;  %v1913_v53 = vpop.permute.xlu0 %1912 }
 0x183   : > { %1005 = vmatprep.mubr.f32.mxu1 %v1965_v1  ;;  %v1924_v2 = vunpack.i.l.bf16 %v1923_v35  ;;  %v1915_v23 = vunpack.i.h.bf16 %v1913_v53  ;;  %v1914_v24 = vunpack.i.l.bf16 %v1913_v53  ;;  %v1925_v25 = vunpack.i.h.bf16 %v1923_v35 }
 0x185   : > { %1752 = vmatmul.mubr.msk.f32.gmra.mrb[2].mxu1 %vm460_vm7, %v1750_v54  ;;  %1736 = vmatmul.mubr.msk.f32.vlgmr.msra.gmra.mrb[4].mxu0 %vm460_vm7, %v1734_v55  ;;  %v569_v39 = vsel %vm567_vm6, %v1914_v24, %v1915_v23 }
 0x186   : > { %v1928_v58 = vpop.permute.xlu1 %1927  ;;  %v1918_v48 = vpop.permute.xlu0 %1917  ;;  %1125 = vmatprep.mubr.f32.mxu1 %v1965_v1  ;;  %545 = vmatprep.mubr.f32.mxu0 %v1965_v1 }
 0x187   : > { %v1930_v61 = vunpack.i.h.bf16 %v1928_v58  ;;  %v1929_v62 = vunpack.i.l.bf16 %v1928_v58  ;;  %v1920_v63 = vunpack.i.h.bf16 %v1918_v48  ;;  %v1919_v0 = vunpack.i.l.bf16 %v1918_v48 }
 0x189   : > { %v1173_v4 = vsel %vm674_vm5, %v1930_v61, %v1904_v57  ;;  %v1175_v5 = vsel %vm674_vm5, %v1170_v44, %v1929_v62  ;;  %1755 = vmatmul.mubr.msk.f32.vlgmr.msra.gmra.mrb[0].mxu1 %vm460_vm7, %v1753_v59  ;;  %v1176_v7 = vsel %vm674_vm5, %v1929_v62, %v1905_v37  ;;  %v1283_v19 = vsel %vm1281_vm8, %v1919_v0, %v1920_v63  ;;  %v1761_v37 = vld [vmem:[%s2379_s3 + $0x70] sm:$0xff]  ;;  %v441_v62 = vld [vmem:[%s2379_s3 + $0x8] sm:$0xff] }
 0x18a   : > { %v1811_v8 = vpack.c.bf16 %v1175_v5, %v1173_v4  ;;  %v1278_v9 = vpop.permute.xlu1 %1277  ;;  %v558_v13 = vpop.permute.xlu0 %557  ;;  %1131 = vmatprep.mubr.f32.mxu1 %v1965_v1  ;;  %v1809_v14 = vpack.c.bf16 %v1176_v7, %v1174_v6  ;;  %v1285_v20 = vsel %vm1281_vm8, %v1924_v2, %v1920_v63  ;;  %1737 = vmatmul.mubr.msk.f32.gmra.mrb[6].mxu0 %vm460_vm7, %v1735_v3  ;;  %v1762_v4 = vld [vmem:[%s2379_s3 + $0x78] sm:$0xff] }
 0x18b   : > { %646 = vmatprep.mubr.f32.mxu0 %v1965_v1  ;;  %v1284_v26 = vsel %vm1281_vm8, %v1278_v9, %v1924_v2  ;;  %v1813_v27 = vpack.c.bf16 %v1285_v20, %v1283_v19  ;;  %v1282_v31 = vsel %vm1281_vm8, %v1925_v25, %v1919_v0  ;;  %v568_v38 = vsel %vm567_vm6, %v558_v13, %v1914_v24  ;;  %v1765_v9 = vld [vmem:[%s2379_s3 + $0x80] sm:$0xff] }
 0x18c   : > { %1810 = vmatprep.subr.bf16.mxu1 %v1809_v14  ;;  %v1815_v32 = vpack.c.bf16 %v1284_v26, %v1282_v31  ;;  %v1766_v14 = vld [vmem:[%s2379_s3 + $0x88] sm:$0xff] }
 0x18d   : > { %1756 = vmatmul.mubr.msk.f32.gmra.mrb[2].mxu1 %vm460_vm7, %v1754_v15 }
 0x18e   : > { %1812 = vmatpush1.bf16.msra.mxu1 %v1811_v8  ;;  %v1943_v28 = vpop.permute.xlu1 %1942  ;;  %v1933_v29 = vpop.permute.xlu0 %1932  ;;  %1251 = vmatprep.mubr.f32.mxu1 %v1965_v1  ;;  %v1741_v8 = vld [vmem:[%s2379_s3 + $0x20] sm:$0xff] }
 0x18f   : > { %v1945_v46 = vunpack.i.h.bf16 %v1943_v28  ;;  %v1944_v60 = vunpack.i.l.bf16 %v1943_v28  ;;  %1814 = vmatprep.subr.bf16.mxu1 %v1813_v27  ;;  %v1935_v40 = vunpack.i.h.bf16 %v1933_v29  ;;  %v1934_v43 = vunpack.i.l.bf16 %v1933_v29 }
 0x191   : > { %v570_v36 = vsel %vm567_vm6, %v558_v13, %v1944_v60  ;;  %1759 = vmatmul.mubr.msk.f32.vlgmr.msra.gmra.mrb[0].mxu1 %vm460_vm7, %v1757_v30  ;;  %v571_v56 = vsel %vm567_vm6, %v1944_v60, %v1945_v46  ;;  %v704_v52 = vsel %vm702_vm4, %v1934_v43, %v1935_v40  ;;  %v1742_v13 = vld [vmem:[%s2379_s3 + $0x28] sm:$0xff] }
 0x192   : > { %v1791_v41 = vpack.c.bf16 %v570_v36, %v568_v38  ;;  %1816 = vmatpush1.bf16.msra.mxu1 %v1815_v32  ;;  %v1948_v42 = vpop.permute.xlu1 %1947  ;;  %v1938_v34 = vpop.permute.xlu0 %1937  ;;  %v1789_v44 = vpack.c.bf16 %v571_v56, %v569_v39  ;;  %1257 = vmatprep.mubr.f32.mxu1 %v1965_v1 }
 0x193   : > { %v1950_v49 = vunpack.i.h.bf16 %v1948_v42  ;;  %v1949_v45 = vunpack.i.l.bf16 %v1948_v42  ;;  %v1940_v50 = vunpack.i.h.bf16 %v1938_v34  ;;  %v1939_v51 = vunpack.i.l.bf16 %v1938_v34 }
 0x194   : > { %1790 = vmatprep.subr.bf16.mxu0 %v1789_v44  ;;  %v1523_v44 = vld [vmem:[%s2381_s5] sm:$0xff] }
 0x195   : > { %1792 = vmatpush1.bf16.msra.mxu0 %v1791_v41  ;;  %1760 = vmatmul.mubr.msk.f32.gmra.mrb[2].mxu1 %vm460_vm7, %v1758_v47  ;;  %v706_v35 = vsel %vm702_vm4, %v1949_v45, %v1950_v49  ;;  %v1409_v63 = vsel %vm430_vm2, %v1939_v51, %v1940_v50  ;;  %v1524_v47 = vld [vmem:[%s2381_s5 + $0x8] sm:$0xff]  ;;  %v1525_v49 = vld [vmem:[%s2381_s5 + $0x10] sm:$0xff] }
 0x196   : > { %v1953_v53 = vpop.permute.xlu1 %1952  ;;  %v693_v54 = vpop.permute.xlu0 %692  ;;  %v1793_v55 = vpack.c.bf16 %v706_v35, %v704_v52  ;;  %1360 = vmatprep.mubr.f32.mxu1 %v1965_v1 }
 0x197   : > { %v1955_v57 = vunpack.i.h.bf16 %v1953_v53  ;;  %v1954_v58 = vunpack.i.l.bf16 %v1953_v53  ;;  %v703_v48 = vsel %vm702_vm4, %v693_v54, %v1934_v43  ;;  %v705_v59 = vsel %vm702_vm4, %v693_v54, %v1949_v45  ;;  %v1526_v45 = vld [vmem:[%s2381_s5 + $0x18] sm:$0xff] }
 0x198   : > { %v1795_v61 = vpack.c.bf16 %v705_v59, %v703_v48  ;;  %1738 = vmatmul.mubr.msk.f32.vlgmr.msra.gmra.mrb[4].mxu0 %vm460_vm7, %v440_v33  ;;  %1794 = vmatprep.subr.bf16.mxu0 %v1793_v55 }
 0x199   : > { %1763 = vmatmul.mubr.msk.f32.vlgmr.msra.gmra.mrb[0].mxu1 %vm460_vm7, %v1761_v37  ;;  %652 = vmatprep.mubr.f32.mxu0 %v1965_v1  ;;  %v1411_v0 = vsel %vm430_vm2, %v1954_v58, %v1940_v50  ;;  %v1408_v5 = vsel %vm430_vm2, %v1955_v57, %v1939_v51 }
 0x19a   : > { %v1405_v2 = vpop.permute.xlu1 %1404  ;;  %1796 = vmatpush1.bf16.msra.mxu0 %v1795_v61  ;;  %1366 = vmatprep.mubr.f32.mxu1 %v1965_v1  ;;  %v1817_v3 = vpack.c.bf16 %v1411_v0, %v1409_v63 }
 0x19b   : > { %v1410_v6 = vsel %vm430_vm2, %v1405_v2, %v1954_v58 }
 0x19c   : > { %v1819_v7 = vpack.c.bf16 %v1410_v6, %v1408_v5  ;;  %1739 = vmatmul.mubr.msk.f32.gmra.mrb[6].mxu0 %vm460_vm7, %v441_v62  ;;  %1818 = vmatprep.subr.bf16.mxu1 %v1817_v3 }
 0x19d   : > { %1764 = vmatmul.mubr.msk.f32.gmra.mrb[2].mxu1 %vm460_vm7, %v1762_v4  ;;  %781 = vmatprep.mubr.f32.mxu0 %v1965_v1 }
 0x19e   : > { %1820 = vmatpush1.bf16.msra.mxu1 %v1819_v7  ;;  %1486 = vmatprep.mubr.f32.mxu1 %v1965_v1 }
 0x1a0   : > { %1743 = vmatmul.mubr.msk.f32.vlgmr.msra.gmra.mrb[4].mxu0 %vm460_vm7, %v1741_v8 }
 0x1a1   : > { %1767 = vmatmul.mubr.msk.f32.vlgmr.msra.gmra.mrb[0].mxu1 %vm460_vm7, %v1765_v9  ;;  %787 = vmatprep.mubr.f32.mxu0 %v1965_v1 }
 0x1a2   : > { %1492 = vmatprep.mubr.f32.mxu1 %v1965_v1 }
 0x1a4   : > { %1744 = vmatmul.mubr.msk.f32.gmra.mrb[6].mxu0 %vm460_vm7, %v1742_v13 }
 0x1a5   : > { %1768 = vmatmul.mubr.msk.f32.gmra.mrb[2].mxu1 %vm460_vm7, %v1766_v14  ;;  %1627 = vmatprep.mubr.f32.mxu0 %v1965_v1 }
 0x1a7   : > { %v1508_v26 = vpop.permute.xlu0 %1507 }
 0x1ab   : > { %v1513_v60 = vpop.permute.xlu1 %1512  ;;  %v1534_v50 = vpop.permute.xlu0 %1533 }
 0x1af   : > { %v1539_v53 = vpop.permute.xlu1 %1538  ;;  %v1544_v59 = vpop.permute.xlu0 %1543 }
 0x1b3   : > { %v1549_v2 = vpop.permute.xlu1 %1548 }
 0x273   : > { %v783_v15 = vpop.f32.mrb[4].mxu0 }
 0x274   : > { %v785_v19 = vpop.f32.mrb[5].mxu0  ;;  %v1488_v20 = vpop.f32.mrb[0].mxu1 }
 0x275   : > { %v1825_v23 = vadd.f32 %v1488_v20, %v783_v15  ;;  %v1490_v24 = vpop.f32.mrb[1].mxu1 }
 0x276   : > { %v1826_v25 = vadd.f32 %v1490_v24, %v785_v19 }
 0x277   : > { %v789_v27 = vpop.f32.mrb[6].mxu0  ;;  %v1515_v30 = vadd.f32 %v1825_v23, %v1508_v26 }
 0x278   : > { %v791_v28 = vpop.f32.mrb[7].mxu0  ;;  %v1494_v29 = vpop.f32.mrb[2].mxu1  ;;  %v1516_v32 = vadd.f32 %v1826_v25, %v1508_v26 }
 0x279   : > { %v1827_v31 = vadd.f32 %v1494_v29, %v789_v27  ;;  %v1496_v46 = vpop.f32.mrb[3].mxu1  ;;  %v1519_v40 = vmax.f32 %v1515_v30, 0.0 }
 0x27a   : > { %v1828_v38 = vadd.f32 %v1496_v46, %v791_v28  ;;  %v1520_v56 = vmax.f32 %v1516_v32, 0.0 }
 0x27b   : > { %v1517_v39 = vadd.f32 %v1827_v31, %v1513_v60 }
 0x27c   : > { %v1518_v36 = vadd.f32 %v1828_v38, %v1513_v60 }
 0x27d   : > { %v1521_v43 = vmax.f32 %v1517_v39, 0.0 }
 0x27e   : > { %v1522_v41 = vmax.f32 %v1518_v36, 0.0 }
 0x27f   : > { %v1823_v42 = vpack.c.bf16 %v1521_v43, %v1519_v40 }
 0x280   : > { %v1821_v34 = vpack.c.bf16 %v1522_v41, %v1520_v56 }
 0x282   : > { %1822 = vmatprep.subr.bf16.mxu0 %v1821_v34 }
 0x283   : > { %1824 = vmatpush1.bf16.msra.mxu0 %v1823_v42 }
 0x286   : > { %1769 = vmatmul.mubr.msk.f32.vlgmr.msra.gmra.mrb[8].mxu0 %vm460_vm7, %v1523_v44 }
 0x287   : > { %1633 = vmatprep.mubr.f32.mxu0 %v1965_v1 }
 0x28a   : > { %1770 = vmatmul.mubr.msk.f32.gmra.mrb[10].mxu0 %vm460_vm7, %v1524_v47 }
 0x28b   : > { %1639 = vmatprep.mubr.f32.mxu0 %v1965_v1 }
 0x28e   : > { %1771 = vmatmul.mubr.msk.f32.gmra.mrb[12].mxu0 %vm460_vm7, %v1525_v49 }
 0x28f   : > { %1645 = vmatprep.mubr.f32.mxu0 %v1965_v1 }
 0x292   : > { %1772 = vmatmul.mubr.msk.f32.gmra.mrb[14].mxu0 %vm460_vm7, %v1526_v45 }
 0x359   : > { %v1629_v51 = vpop.f32.mrb[8].mxu0 }
 0x35a   : > { %v1630_v33 = vadd.f32 %v1629_v51, %v1534_v50  ;;  %v1631_v52 = vpop.f32.mrb[9].mxu0 }
 0x35b   : > { %v1632_v1 = vadd.f32 %v1631_v52, %v1534_v50 }
 0x35c   : > { %v1652_v35 = vadd.f32 %v1630_v33, %v2054_v12 }
 0x35d   : > { %v1653_v54 = vadd.f32 %v1632_v1, %v2050_v10  ;;  %v1635_v55 = vpop.f32.mrb[10].mxu0 }
 0x35e   : > { %1660 = vst [vmem:[%s2355_s12] sm:$0xff] %v1652_v35  ;;  %v1636_v37 = vadd.f32 %v1635_v55, %v1539_v53  ;;  %v1637_v57 = vpop.f32.mrb[11].mxu0 }
 0x35f   : > { %1661 = vst [vmem:[%s2355_s12 + $0x8] sm:$0xff] %v1653_v54  ;;  %v1638_v58 = vadd.f32 %v1637_v57, %v1539_v53 }
 0x360   : > { %v1654_v48 = vadd.f32 %v1636_v37, %v2058_v16 }
 0x361   : > { %v1655_v61 = vadd.f32 %v1638_v58, %v2052_v11  ;;  %v1641_v62 = vpop.f32.mrb[12].mxu0 }
 0x362   : > { %1662 = vst [vmem:[%s2355_s12 + $0x10] sm:$0xff] %v1654_v48  ;;  %v1642_v12 = vadd.f32 %v1641_v62, %v1544_v59  ;;  %v1643_v63 = vpop.f32.mrb[13].mxu0 }
 0x363   : > { %1663 = vst [vmem:[%s2355_s12 + $0x18] sm:$0xff] %v1655_v61  ;;  %v1644_v10 = vadd.f32 %v1643_v63, %v1544_v59 }
 0x364   : > { %v1656_v0 = vadd.f32 %v1642_v12, %v2068_v21 }
 0x365   : > { %v1657_v3 = vadd.f32 %v1644_v10, %v2060_v17  ;;  %v1647_v4 = vpop.f32.mrb[14].mxu0 }
 0x366   : > { %1664 = vst [vmem:[%s2355_s12 + $0x20] sm:$0xff] %v1656_v0  ;;  %v1648_v16 = vadd.f32 %v1647_v4, %v1549_v2  ;;  %v1649_v5 = vpop.f32.mrb[15].mxu0 }
 0x367   : > { %1665 = vst [vmem:[%s2355_s12 + $0x28] sm:$0xff] %v1657_v3  ;;  %v1650_v6 = vadd.f32 %v1649_v5, %v1549_v2 }
 0x368   : > { %v1658_v11 = vadd.f32 %v1648_v16, %v2070_v22 }
 0x369   : > { %v1659_v7 = vadd.f32 %v1650_v6, %v2062_v18 }
 0x36a   : > { %1666 = vst [vmem:[%s2355_s12 + $0x30] sm:$0xff] %v1658_v11 }
 0x36b   : > { %1667 = vst [vmem:[%s2355_s12 + $0x38] sm:$0xff] %v1659_v7 }
 0x36c PF: > { %s18_s27 = sadd.s32 1, %s1963_s27  }
 0x36d   : > { %p15_p4 = scmp.ge.s32.totalorder %s18_s27, 4  }
 0x36f   :  { %17 = sbr.rel (!%p15_p4) target bundleno = 1 (0x1), region = 91 }

</bundles_post_ra>
